<compile_context>
chip_gen: v6e
topology: v6e:2x2x1
jax: 0.10.0
libtpu: 0.0.40
codegen_flags: <defaults>
</compile_context>

<pallas_src>
import functools
import math

import jax
import jax.numpy as jnp
from jax import lax
from jax.experimental import pallas as pl
from jax.experimental.pallas import tpu as pltpu


_TARGET_BLOCK_BYTES = 4 * 1024 * 1024        # ~4 MiB per input block (4-D path)
_ELEM_TARGET_BLOCK_BYTES = 2 * 1024 * 1024   # ~2 MiB per array (3 streamed arrays)
_VMEM_LIMIT_BYTES = 64 * 1024 * 1024         # raise scoped VMEM; <= v7x physical


# ---------------------------------------------------------------------------
# Tile sizing helpers
# ---------------------------------------------------------------------------
def _pick_lane_tile(L, rows_per_block, itemsize, target_bytes=_TARGET_BLOCK_BYTES):
    """Lane tile: a 128-multiple sized by bytes; full dim only when L <= 128."""
    if L <= 128:
        return int(L)                         # full-dim block is always legal
    max_tl = (L // 128) * 128                 # edge handled by masking, never full-L
    want = target_bytes // max(1, rows_per_block * itemsize)
    tl = max(128, (want // 128) * 128)
    return int(min(tl, max_tl))


def _pick_batch_tile(B, per_batch_block_bytes, n_lane_tiles,
                     target_bytes=_TARGET_BLOCK_BYTES):
    """Batch tile (divisor of B) when a single-batch block is still small."""
    if B <= 1 or per_batch_block_bytes >= target_bytes:
        return 1
    best = 1
    for cand in range(2, B + 1):
        if B % cand != 0:
            continue
        if cand * per_batch_block_bytes > target_bytes:
            break
        if n_lane_tiles == 1 and cand == B:
            continue                          # keep >=2 parallel grid points (megacore)
        best = cand
    return best


# ---------------------------------------------------------------------------
# Kernels
# ---------------------------------------------------------------------------
def _cons_sum_kernel(stu_ref, tea_ref, tmask_ref, num_ref, *, inv_c, L, tl):
    # stu/tea: (TB, C, TL)   tmask: (TB, C, 1)   num: (1, 1, 1)
    j = pl.program_id(1)
    diff = stu_ref[...].astype(jnp.float32) - tea_ref[...].astype(jnp.float32)
    diff = diff * tmask_ref[...]                               # lane-broadcast
    lm = jnp.sum(diff * diff, axis=1, keepdims=True) * inv_c   # (TB, 1, TL)
    lane = lax.broadcasted_iota(jnp.int32, lm.shape, 2) + j * tl
    lm = jnp.where(lane < L, lm, 0.0)                          # drop padded edge lanes
    num_ref[...] = jnp.sum(lm, keepdims=True)


def _cons_sum_vm_kernel(stu_ref, tea_ref, tmask_ref, vmask_ref, num_ref, den_ref,
                        *, inv_c, L, tl):
    # stu/tea: (TB, C, TL)  tmask: (TB, C, 1)  vmask: (TB, 1, TL)  num/den: (1,1,1)
    j = pl.program_id(1)
    diff = stu_ref[...].astype(jnp.float32) - tea_ref[...].astype(jnp.float32)
    diff = diff * tmask_ref[...]
    lm = jnp.sum(diff * diff, axis=1, keepdims=True) * inv_c   # (TB, 1, TL)
    w = vmask_ref[...]
    lane = lax.broadcasted_iota(jnp.int32, lm.shape, 2) + j * tl
    inb = lane < L
    num_ref[...] = jnp.sum(jnp.where(inb, lm * w, 0.0), keepdims=True)
    den_ref[...] = jnp.sum(jnp.where(inb, w, 0.0), keepdims=True)


def _cons_elem_kernel(stu_ref, tea_ref, msk_ref, out_ref):
    # stu/tea/out: (TR, TD)   msk: (TR, 1)
    diff = (stu_ref[...].astype(jnp.float32)
            - tea_ref[...].astype(jnp.float32)) * msk_ref[...]
    out_ref[...] = (diff * diff).astype(out_ref.dtype)


# ---------------------------------------------------------------------------
# pallas_call wrappers
# ---------------------------------------------------------------------------
def _fused_mean_pallas(stu3, tea3, tea_mask, valid_mask):
    """(B, C, L) -> scalar mean of the (optionally masked) channel-mean sq diff."""
    B, C, L = stu3.shape
    itemsize = max(jnp.dtype(stu3.dtype).itemsize, jnp.dtype(tea3.dtype).itemsize)
    tl = _pick_lane_tile(L, C, itemsize)
    nj = pl.cdiv(L, tl)
    tb = _pick_batch_tile(B, C * tl * itemsize, nj)
    nb = B // tb
    grid = (nb, nj)
    inv_c = 1.0 / float(C)

    if tea_mask is None:
        tmask = jnp.ones((B, C, 1), jnp.float32)   # negligible traffic, one code path
    else:
        tmask = tea_mask.reshape(B, C, 1).astype(jnp.float32)

    in_specs = [
        pl.BlockSpec((tb, C, tl), lambda b, j: (b, 0, j)),
        pl.BlockSpec((tb, C, tl), lambda b, j: (b, 0, j)),
        pl.BlockSpec((tb, C, 1), lambda b, j: (b, 0, 0)),
    ]
    args = [stu3, tea3, tmask]

    def out_index(b, j):
        return (b * nj + j, 0, 0)

    part_shape = jax.ShapeDtypeStruct((nb * nj, 1, 1), jnp.float32)
    flops = 5 * B * C * L
    bytes_accessed = 2 * B * C * L * itemsize + B * C * 4 + nb * nj * 4
    compiler_params = pltpu.CompilerParams(
        dimension_semantics=("parallel", "parallel"),
        vmem_limit_bytes=_VMEM_LIMIT_BYTES)

    if valid_mask is not None:
        vm = valid_mask.reshape(B, 1, L).astype(jnp.float32)
        in_specs.append(pl.BlockSpec((tb, 1, tl), lambda b, j: (b, 0, j)))
        args.append(vm)
        bytes_accessed += B * L * 4 + nb * nj * 4
        num, den = pl.pallas_call(
            functools.partial(_cons_sum_vm_kernel, inv_c=inv_c, L=L, tl=tl),
            out_shape=(part_shape, part_shape),
            grid_spec=pltpu.PrefetchScalarGridSpec(
                num_scalar_prefetch=0, grid=grid, in_specs=in_specs,
                out_specs=[pl.BlockSpec((1, 1, 1), out_index),
                           pl.BlockSpec((1, 1, 1), out_index)]),
            compiler_params=compiler_params,
            cost_estimate=pl.CostEstimate(flops=flops, transcendentals=0,
                                          bytes_accessed=int(bytes_accessed)),
        )(*args)
        # valid_mask all-False -> 0/0 = NaN, matching torch's mean of an empty select.
        return jnp.sum(num) / jnp.sum(den)

    num = pl.pallas_call(
        functools.partial(_cons_sum_kernel, inv_c=inv_c, L=L, tl=tl),
        out_shape=part_shape,
        grid_spec=pltpu.PrefetchScalarGridSpec(
            num_scalar_prefetch=0, grid=grid, in_specs=in_specs,
            out_specs=pl.BlockSpec((1, 1, 1), out_index)),
        compiler_params=compiler_params,
        cost_estimate=pl.CostEstimate(flops=flops, transcendentals=0,
                                      bytes_accessed=int(bytes_accessed)),
    )(*args)
    return jnp.sum(num) / float(B * L)


def _elem_loss_pallas(stu, tea, tea_mask):
    """3-D '4096' branch: (B, N, D) -> un-reduced ((stu - tea) * mask)**2."""
    B, N, D = stu.shape
    R = B * N
    out_dtype = jnp.promote_types(stu.dtype, tea.dtype)
    itemsize = max(jnp.dtype(stu.dtype).itemsize, jnp.dtype(out_dtype).itemsize)

    td = _pick_lane_tile(D, 8, itemsize, target_bytes=_ELEM_TARGET_BLOCK_BYTES)
    if R < 8:
        tr = R                                   # full-dim block (always legal)
    else:
        want_r = max(8, _ELEM_TARGET_BLOCK_BYTES // max(1, td * itemsize))
        tr = max(8, min((want_r // 8) * 8, ((R + 7) // 8) * 8))
    grid = (pl.cdiv(R, tr), pl.cdiv(D, td))

    stu2 = stu.reshape(R, D)
    tea2 = tea.reshape(R, D)
    msk2 = tea_mask.reshape(R, 1).astype(jnp.float32)

    flops = 3 * R * D
    bytes_accessed = (2 * R * D * itemsize
                      + R * D * jnp.dtype(out_dtype).itemsize + R * 4)

    out2 = pl.pallas_call(
        _cons_elem_kernel,
        out_shape=jax.ShapeDtypeStruct((R, D), out_dtype),
        grid_spec=pltpu.PrefetchScalarGridSpec(
            num_scalar_prefetch=0, grid=grid,
            in_specs=[pl.BlockSpec((tr, td), lambda i, j: (i, j)),
                      pl.BlockSpec((tr, td), lambda i, j: (i, j)),
                      pl.BlockSpec((tr, 1), lambda i, j: (i, 0))],
            out_specs=pl.BlockSpec((tr, td), lambda i, j: (i, j))),
        compiler_params=pltpu.CompilerParams(
            dimension_semantics=("parallel", "parallel"),
            vmem_limit_bytes=_VMEM_LIMIT_BYTES),
        cost_estimate=pl.CostEstimate(flops=flops, transcendentals=0,
                                      bytes_accessed=int(bytes_accessed)),
    )(stu2, tea2, msk2)
    return out2.reshape(B, N, D)


# ---------------------------------------------------------------------------
# Public entry point (ConsLoss.forward equivalent)
# ---------------------------------------------------------------------------
@jax.jit
def cons_loss(stu_out, tea_out, valid_mask=None, tea_mask=None):
    if tea_mask is not None and stu_out.ndim == 3 and stu_out.shape[2] == 4096:
        # Un-reduced elementwise branch of ConsLoss.forward.
        return _elem_loss_pallas(stu_out, tea_out, tea_mask)
    # TODO(synk): torch would also take the '4096' branch for 4-D inputs with
    # H == 4096, but that combination fails to broadcast in torch and is not
    # replicated here.
    B, C = stu_out.shape[0], stu_out.shape[1]
    L = int(math.prod(stu_out.shape[2:]))
    return _fused_mean_pallas(stu_out.reshape(B, C, L),
                              tea_out.reshape(B, C, L),
                              tea_mask, valid_mask)


# ---------------------------------------------------------------------------
# Pure-JAX reference + self-test
# ---------------------------------------------------------------------------
def _reference(stu_out, tea_out, valid_mask=None, tea_mask=None):
    diff = stu_out.astype(jnp.float32) - tea_out.astype(jnp.float32)
    if tea_mask is not None:
        if stu_out.ndim == 3 and stu_out.shape[2] == 4096:
            diff = diff * tea_mask[:, :, None].astype(jnp.float32)
            return diff ** 2
        diff = diff * tea_mask[:, :, None, None].astype(jnp.float32)
    loss_map = jnp.mean(diff ** 2, axis=1)
    if valid_mask is not None:
        vm = valid_mask.reshape(loss_map.shape).astype(jnp.float32)
        return jnp.sum(loss_map * vm) / jnp.sum(vm)
    return jnp.mean(loss_map)


if __name__ == "__main__":
    key = jax.random.PRNGKey(0)
    ks = jax.random.split(key, 12)

    # 1) 4-D main path: (B, C, H, W) with teacher mask + valid mask (f32).
    B, C, H, W = 2, 4, 16, 16
    stu = jax.random.normal(ks[0], (B, C, H, W), dtype=jnp.float32)
    tea = jax.random.normal(ks[1], (B, C, H, W), dtype=jnp.float32)
    tea_mask = (jax.random.uniform(ks[2], (B, C)) > 0.3).astype(jnp.float32)
    valid_mask = jax.random.uniform(ks[3], (B, H, W)) > 0.3
    out1 = jax.block_until_ready(cons_loss(stu, tea, valid_mask, tea_mask))
    ref1 = _reference(stu, tea, valid_mask, tea_mask)
    assert out1.shape == ()
    assert jnp.allclose(out1, ref1, atol=1e-5, rtol=1e-5), (out1, ref1)

    # 2) 4-D path, no masks.
    out2 = jax.block_until_ready(cons_loss(stu, tea))
    ref2 = _reference(stu, tea)
    assert jnp.allclose(out2, ref2, atol=1e-5, rtol=1e-5), (out2, ref2)

    # 3) 4-D path, unaligned spatial extent (exercises lane-edge masking).
    Hu, Wu = 10, 13
    stu_u = jax.random.normal(ks[4], (B, C, Hu, Wu), dtype=jnp.float32)
    tea_u = jax.random.normal(ks[5], (B, C, Hu, Wu), dtype=jnp.float32)
    vm_u = jax.random.uniform(ks[6], (B, Hu, Wu)) > 0.4
    out3 = jax.block_until_ready(cons_loss(stu_u, tea_u, vm_u, None))
    ref3 = _reference(stu_u, tea_u, vm_u, None)
    assert jnp.allclose(out3, ref3, atol=1e-5, rtol=1e-5), (out3, ref3)

    # 4) 4-D path in bf16 inputs (native-dtype streaming, in-kernel f32 upcast).
    stu_b = stu.astype(jnp.bfloat16)
    tea_b = tea.astype(jnp.bfloat16)
    out4 = jax.block_until_ready(cons_loss(stu_b, tea_b, valid_mask, tea_mask))
    ref4 = _reference(stu_b, tea_b, valid_mask, tea_mask)
    assert jnp.allclose(out4, ref4, atol=1e-4, rtol=1e-4), (out4, ref4)

    # 5) 3-D "4096" branch: returns the un-reduced elementwise loss map.
    Bn, Nn, Dn = 2, 4, 4096
    stu3 = jax.random.normal(ks[7], (Bn, Nn, Dn), dtype=jnp.float32)
    tea3 = jax.random.normal(ks[8], (Bn, Nn, Dn), dtype=jnp.float32)
    tmask3 = (jax.random.uniform(ks[9], (Bn, Nn)) > 0.5).astype(jnp.float32)
    out5 = jax.block_until_ready(cons_loss(stu3, tea3, None, tmask3))
    ref5 = _reference(stu3, tea3, None, tmask3)
    assert out5.shape == (Bn, Nn, Dn)
    assert jnp.allclose(out5, ref5, atol=1e-5, rtol=1e-5)

    print("KERNEL_OK")
</pallas_src>

<mosaic_0001>
module attributes {stable_mosaic.version = 11 : i64} {
  func.func @_cons_sum_vm_kernel(%arg0: i32, %arg1: i32, %arg2: memref<1x4x256xf32, #tpu.memory_space<vmem>>, %arg3: memref<1x4x256xf32, #tpu.memory_space<vmem>>, %arg4: memref<1x4x1xf32, #tpu.memory_space<vmem>>, %arg5: memref<1x1x256xf32, #tpu.memory_space<vmem>>, %arg6: memref<1x1x1xf32, #tpu.memory_space<vmem>>, %arg7: memref<1x1x1xf32, #tpu.memory_space<vmem>>) attributes {dimension_semantics = [#tpu.dimension_semantics<parallel>, #tpu.dimension_semantics<parallel>], iteration_bounds = array<i64: 2, 1>, scalar_prefetch = 0 : i64, scratch_operands = 0 : i64, tpu.core_type = #tpu.core_type<tc>, window_params = [{transform_indices = @transform_0, window_bounds = array<i64: 1, 4, 256>}, {transform_indices = @transform_1, window_bounds = array<i64: 1, 4, 256>}, {transform_indices = @transform_2, window_bounds = array<i64: 1, 4, 1>}, {transform_indices = @transform_3, window_bounds = array<i64: 1, 1, 256>}, {transform_indices = @transform_4, window_bounds = array<i64: 1, 1, 1>}, {transform_indices = @transform_5, window_bounds = array<i64: 1, 1, 1>}]} {
    %c0 = arith.constant 0 : index
    %c0_0 = arith.constant 0 : index
    %c0_1 = arith.constant 0 : index
    %0 = vector.load %arg2[%c0, %c0_0, %c0_1] : memref<1x4x256xf32, #tpu.memory_space<vmem>>, vector<1x4x256xf32>
    %c0_2 = arith.constant 0 : index
    %c0_3 = arith.constant 0 : index
    %c0_4 = arith.constant 0 : index
    %1 = vector.load %arg3[%c0_2, %c0_3, %c0_4] : memref<1x4x256xf32, #tpu.memory_space<vmem>>, vector<1x4x256xf32>
    %2 = arith.subf %0, %1 : vector<1x4x256xf32>
    %c0_5 = arith.constant 0 : index
    %c0_6 = arith.constant 0 : index
    %c0_7 = arith.constant 0 : index
    %3 = vector.load %arg4[%c0_5, %c0_6, %c0_7] : memref<1x4x1xf32, #tpu.memory_space<vmem>>, vector<1x4x1xf32>
    %4 = vector.broadcast %3 : vector<1x4x1xf32> to vector<1x4x256xf32>
    %5 = arith.mulf %2, %4 : vector<1x4x256xf32>
    %6 = arith.mulf %5, %5 : vector<1x4x256xf32>
    %cst = arith.constant dense<0.000000e+00> : vector<1x256xf32>
    %7 = vector.multi_reduction <add>, %6, %cst [1] : vector<1x4x256xf32> to vector<1x256xf32>
    %8 = vector.shape_cast %7 : vector<1x256xf32> to vector<1x1x256xf32>
    %cst_8 = arith.constant 2.500000e-01 : f32
    %9 = vector.broadcast %cst_8 : f32 to vector<1x1x256xf32>
    %10 = arith.mulf %8, %9 : vector<1x1x256xf32>
    %c0_9 = arith.constant 0 : index
    %c0_10 = arith.constant 0 : index
    %c0_11 = arith.constant 0 : index
    %11 = vector.load %arg5[%c0_9, %c0_10, %c0_11] : memref<1x1x256xf32, #tpu.memory_space<vmem>>, vector<1x1x256xf32>
    %12 = tpu.iota {dimensions = array<i32: 2>} : vector<1x1x256xi32>
    %c256_i32 = arith.constant 256 : i32
    %13 = arith.muli %arg1, %c256_i32 : i32
    %14 = vector.broadcast %13 : i32 to vector<1x1x256xi32>
    %15 = arith.addi %12, %14 : vector<1x1x256xi32>
    %c256_i32_12 = arith.constant 256 : i32
    %16 = vector.broadcast %c256_i32_12 : i32 to vector<1x1x256xi32>
    %17 = arith.cmpi slt, %15, %16 : vector<1x1x256xi32>
    %18 = arith.mulf %10, %11 : vector<1x1x256xf32>
    %cst_13 = arith.constant 0.000000e+00 : f32
    %19 = vector.broadcast %cst_13 : f32 to vector<1x1x256xf32>
    %20 = arith.select %17, %18, %19 : vector<1x1x256xi1>, vector<1x1x256xf32>
    %21 = vector.shape_cast %20 : vector<1x1x256xf32> to vector<1x1x1x256xf32>
    %cst_14 = arith.constant dense<0.000000e+00> : vector<1xf32>
    %22 = vector.multi_reduction <add>, %21, %cst_14 [1, 2, 3] : vector<1x1x1x256xf32> to vector<1xf32>
    %23 = vector.shape_cast %22 : vector<1xf32> to vector<1x1x1x1xf32>
    %24 = vector.extract %23[0, 0, 0, 0] : f32 from vector<1x1x1x1xf32>
    %25 = vector.broadcast %24 : f32 to vector<1x1x1xf32>
    %c0_15 = arith.constant 0 : index
    %c0_16 = arith.constant 0 : index
    %c0_17 = arith.constant 0 : index
    %26 = vector.load %arg6[%c0_15, %c0_16, %c0_17] : memref<1x1x1xf32, #tpu.memory_space<vmem>>, vector<1x1x1xf32>
    tpu.vector_store %arg6[%c0_15, %c0_16, %c0_17], %25 {strides = array<i32>} : memref<1x1x1xf32, #tpu.memory_space<vmem>>, vector<1x1x1xf32>,
    %cst_18 = arith.constant 0.000000e+00 : f32
    %27 = vector.broadcast %cst_18 : f32 to vector<1x1x256xf32>
    %28 = arith.select %17, %11, %27 : vector<1x1x256xi1>, vector<1x1x256xf32>
    %29 = vector.shape_cast %28 : vector<1x1x256xf32> to vector<1x1x1x256xf32>
    %cst_19 = arith.constant dense<0.000000e+00> : vector<1xf32>
    %30 = vector.multi_reduction <add>, %29, %cst_19 [1, 2, 3] : vector<1x1x1x256xf32> to vector<1xf32>
    %31 = vector.shape_cast %30 : vector<1xf32> to vector<1x1x1x1xf32>
    %32 = vector.extract %31[0, 0, 0, 0] : f32 from vector<1x1x1x1xf32>
    %33 = vector.broadcast %32 : f32 to vector<1x1x1xf32>
    %c0_20 = arith.constant 0 : index
    %c0_21 = arith.constant 0 : index
    %c0_22 = arith.constant 0 : index
    %34 = vector.load %arg7[%c0_20, %c0_21, %c0_22] : memref<1x1x1xf32, #tpu.memory_space<vmem>>, vector<1x1x1xf32>
    tpu.vector_store %arg7[%c0_20, %c0_21, %c0_22], %33 {strides = array<i32>} : memref<1x1x1xf32, #tpu.memory_space<vmem>>, vector<1x1x1xf32>,
    return
  }
  func.func @transform_0(%arg0: i32, %arg1: i32) -> (i32, i32, i32) {
    %c0_i32 = arith.constant 0 : i32
    %c0_i32_0 = arith.constant 0 : i32
    return %arg0, %c0_i32, %arg1 : i32, i32, i32
  }
  func.func @transform_1(%arg0: i32, %arg1: i32) -> (i32, i32, i32) {
    %c0_i32 = arith.constant 0 : i32
    %c0_i32_0 = arith.constant 0 : i32
    return %arg0, %c0_i32, %arg1 : i32, i32, i32
  }
  func.func @transform_2(%arg0: i32, %arg1: i32) -> (i32, i32, i32) {
    %c0_i32 = arith.constant 0 : i32
    %c0_i32_0 = arith.constant 0 : i32
    %c0_i32_1 = arith.constant 0 : i32
    return %arg0, %c0_i32, %c0_i32_0 : i32, i32, i32
  }
  func.func @transform_3(%arg0: i32, %arg1: i32) -> (i32, i32, i32) {
    %c0_i32 = arith.constant 0 : i32
    %c0_i32_0 = arith.constant 0 : i32
    return %arg0, %c0_i32, %arg1 : i32, i32, i32
  }
  func.func @transform_4(%arg0: i32, %arg1: i32) -> (i32, i32, i32) {
    %c1_i32 = arith.constant 1 : i32
    %0 = arith.muli %arg0, %c1_i32 : i32
    %1 = arith.addi %0, %arg1 : i32
    %c0_i32 = arith.constant 0 : i32
    %c0_i32_0 = arith.constant 0 : i32
    %c0_i32_1 = arith.constant 0 : i32
    return %1, %c0_i32, %c0_i32_0 : i32, i32, i32
  }
  func.func @transform_5(%arg0: i32, %arg1: i32) -> (i32, i32, i32) {
    %c1_i32 = arith.constant 1 : i32
    %0 = arith.muli %arg0, %c1_i32 : i32
    %1 = arith.addi %0, %arg1 : i32
    %c0_i32 = arith.constant 0 : i32
    %c0_i32_0 = arith.constant 0 : i32
    %c0_i32_1 = arith.constant 0 : i32
    return %1, %c0_i32, %c0_i32_0 : i32, i32, i32
  }
}

</mosaic_0001>

<bundles_post_ra>
// kernel: cons_loss.1
= control target key start
LH: loop header
LB: loop body
LE: loop exit
PB: predicated region body
PF: predicated region fallthrough
CT: control target
= control target key end

     0   :  { %s689_s18 = smov 0   ;;  %s691_s19 = smov 0   ;;  %s745_s0 = inlined_call_operand.vmem [shape: f32[2,4,256], index: 0, kind: input, shape index: {}]   ;;  %s746_s1 = inlined_call_operand.vmem [shape: f32[2,4,256], index: 1, kind: input, shape index: {}]   ;;  %s747_s2 = inlined_call_operand.vmem [shape: f32[2,4,1], index: 2, kind: input, shape index: {}]   ;;  %s748_s3 = inlined_call_operand.vmem [shape: f32[2,1,256], index: 3, kind: input, shape index: {}]   ;;  %s749_s4 = inlined_call_operand.vmem [shape: f32[2,1,1], index: 4, kind: output, shape index: {0}]   ;;  %s750_s5 = inlined_call_operand.vmem [shape: f32[2,1,1], index: 5, kind: output, shape index: {1}]  }
   0x1   :  { %s693_s20 = smov 0  }
   0x2 LB: > { %s28_s21 = sadd.s32 1, %s651_s19  ;;  %p591_p0 = scmp.ge.s32.totalorder %s655_s20, 1  ;;  %s655_s20 = sphi %s693_s20, %s16_s20   ;;  %s651_s19 = sphi %s691_s19, %s752_s19   ;;  %s647_s18 = sphi %s689_s18, %s751_s18  }
   0x3   : > { %p30_p1 = scmp.ge.s32.totalorder %s28_s21, 2  ;;  %p255_p2 = scmp.lt.s32.totalorder %s655_s20, 3 }
   0x5   : > { %s754_s21 = smov (%p30_p1, %s28_s21), 0  ;;  %p256_p3 = pnand %p591_p0, %p255_p2 }
   0x6   : > { %p312_p4 = scmp.lt.s32.totalorder (!%p256_p3), %s647_s18, 1 }
   0x7   : > { %259 = sbr.rel (%p256_p3) target bundleno = 371 (0x173), region = 36 }
   0xc   : > { %v657_v0 = vmov 0   ;;  %s756_s18 = smov (!%p312_p4, %s647_s18), 1  ;;  %v365_v2 = vlaneseq  ;;  %vm417_vm0 = vcmask 1040384   ;;  %v658_v12 = vmov 839922192  }
   0xd   : > { %632 = vset.pattern.permute.xlu0 %v657_v0  ;;  %s596_s22 = sshll.u32 %s756_s18, 2  ;;  %s597_s26 = sshll.u32 %s756_s18, 1  ;;  %v363_v13 = vunpack.c.l.s4 %v658_v12  ;;  %vm375_vm1 = vcmask 1043456   ;;  %vm431_vm2 = vcmask 0  }
   0xe   : > { %s334_s25 = scalar_lea.vmem %s747_s2, %s596_s22  ;;  %v366_v3 = vshrl.u32 %v365_v2, 7  ;;  %s342_s29 = scalar_lea.vmem %s748_s3, %s597_s26 }
   0xf   : > { %v357_v1 = vld [vmem:[%s334_s25] sm:$0xf]  ;;  %s600_s30 = sshll.u32 %s756_s18, 3  ;;  %v364_v14 = vunpack.c.0.s8 %v363_v13  ;;  %s347_s14 = scalar_lea.vmem %s749_s4, %s756_s18 }
  0x10   : > { %360 = vperm.xlu0 %632, %v357_v1   ;;  %v405_v4 = vsub.s32 0, %v366_v3  ;;  %v409_v5 = vsub.s32 1, %v366_v3  ;;  %v392_v6 = vld [vmem:[%s342_s29] sm:$0x3]  ;;  %s319_s8 = scalar_lea.vmem %s745_s0, %s600_s30  ;;  %s329_s11 = scalar_lea.vmem %s746_s1, %s600_s30 }
  0x11   : > { %v354_v15 = vld [vmem:[%s319_s8] sm:$0xff]  ;;  %v367_v17 = vsub.s32 %v364_v14, %v366_v3  ;;  %s352_s22 = scalar_lea.vmem %s750_s5, %s756_s18 }
  0x12   : > { %v406_v7 = vrot.slane %v392_v6, %v405_v4  ;;  %v410_v8 = vrot.slane %v392_v6, %v409_v5  ;;  %v355_v16 = vld [vmem:[%s329_s11] sm:$0xff] }
  0x13   : > { %v356_v18 = vsub.f32 %v354_v15, %v355_v16 }
  0x14   : > { %v435_v9 = vsel %vm417_vm0, %v406_v7, 0.0  ;;  %v436_v10 = vsel %vm417_vm0, %v410_v8, 0.0 }
  0x15   : > { %v437_v11 = vadd.f32 %v436_v10, %v435_v9 }
  0x17   : > { %438 = vadd.xlane.f32.xlu1 %v437_v11 }
  0x8b   : > { %v361_v19 = vpop.permute.xlu0 %360 }
  0x8c   : > { %v368_v20 = vrot.slane %v361_v19, %v367_v17 }
  0x8e   : > { %v370_v21 = vmul.f32 %v368_v20, %v356_v18 }
  0x90   : > { %v371_v22 = vmul.f32 %v370_v21, %v370_v21 }
  0x92   : > { %v373_v23 = vcombine.high %v371_v22, %v371_v22  ;;  %v376_v24 = vsel %vm375_vm1, %v371_v22, 0.0 }
  0x93   : > { %v377_v25 = vrot.slane %v376_v24, 4 }
  0x94   : > { %v383_v26 = vsel %vm375_vm1, %v373_v23, 0.0 }
  0x95   : > { %v378_v27 = vadd.f32 %v377_v25, %v376_v24  ;;  %v384_v28 = vrot.slane %v383_v26, 4 }
  0x97   : > { %v379_v29 = vrot.slane %v378_v27, 2  ;;  %v385_v30 = vadd.f32 %v384_v28, %v383_v26 }
  0x99   : > { %v380_v31 = vadd.f32 %v379_v29, %v378_v27  ;;  %v386_v32 = vrot.slane %v385_v30, 2 }
  0x9b   : > { %v381_v33 = vrot.slane %v380_v31, 1  ;;  %v387_v34 = vadd.f32 %v386_v32, %v385_v30 }
  0x9d   : > { %v382_v35 = vadd.f32 %v381_v33, %v380_v31  ;;  %v388_v36 = vrot.slane %v387_v34, 1 }
  0x9f   : > { %v389_v37 = vadd.f32 %v388_v36, %v387_v34  ;;  %v390_v38 = vmul.f32 0.25, %v382_v35 }
  0xa0   : > { %v439_v45 = vpop.xlane.xlu1 %438 }
  0xa1   : > { %v391_v39 = vmul.f32 0.25, %v389_v37  ;;  %v413_v40 = vmul.f32 %v406_v7, %v390_v38  ;;  %v440_v46 = vrot.slane %v439_v45, 4 }
  0xa3   : > { %v414_v41 = vmul.f32 %v410_v8, %v391_v39  ;;  %v418_v42 = vsel %vm417_vm0, %v413_v40, 0.0  ;;  %v441_v47 = vadd.f32 %v440_v46, %v439_v45 }
  0xa5   : > { %v419_v43 = vsel %vm417_vm0, %v414_v41, 0.0  ;;  %v442_v48 = vrot.slane %v441_v47, 2 }
  0xa6   : > { %v420_v44 = vadd.f32 %v419_v43, %v418_v42 }
  0xa7   : > { %v443_v52 = vadd.f32 %v442_v48, %v441_v47 }
  0xa8   : > { %421 = vadd.xlane.f32.xlu0 %v420_v44 }
  0xa9   : > { %v444_v55 = vrot.slane %v443_v52, 1 }
  0xab   : > { %v445_v58 = vadd.f32 %v444_v55, %v443_v52 }
 0x131   : > { %v422_v49 = vpop.xlane.xlu0 %421 }
 0x132   : > { %v423_v50 = vrot.slane %v422_v49, 4 }
 0x134   : > { %v424_v51 = vadd.f32 %v423_v50, %v422_v49 }
 0x136   : > { %v425_v53 = vrot.slane %v424_v51, 2 }
 0x138   : > { %v426_v54 = vadd.f32 %v425_v53, %v424_v51 }
 0x13a   : > { %v427_v56 = vrot.slane %v426_v54, 1 }
 0x13c   : > { %v428_v57 = vadd.f32 %v427_v56, %v426_v54 }
 0x13e   : > { %602 = vpush %v428_v57 }
 0x13f   : > { %604 = vpush %v445_v58 }
 0x16f   : > { %s603_s15 = spop %602 }
 0x170   : > { %v430_v59 = vstv %s603_s15  ;;  %s605_s23 = spop %604 }
 0x171   : > { %432 = vst.msk [vmem:[%s347_s14] sm:$0x1] %vm431_vm2, %v430_v59  ;;  %v447_v60 = vstv %s605_s23 }
 0x172   : > { %448 = vst.msk [vmem:[%s352_s22] sm:$0x1] %vm431_vm2, %v447_v60 }
 0x173 PF: > { %s16_s20 = sadd.s32 1, %s655_s20   ;;  %s751_s18 = smov %s651_s19 }
 0x174   : > { %p13_p5 = scmp.ge.s32.totalorder %s16_s20, 4   ;;  %s752_s19 = smov %s754_s21 }
 0x176   :  { %15 = sbr.rel (!%p13_p5) target bundleno = 2 (0x2), region = 87 }

</bundles_post_ra>
